<compile_context>
chip_gen: v7x
topology: tpu7x:2x2x1
jax: 0.10.0
libtpu: 0.0.40
codegen_flags: <defaults>
</compile_context>

<pallas_src>
import functools

import jax
import jax.numpy as jnp
from jax import lax
from jax.experimental import pallas as pl
from jax.experimental.pallas import tpu as pltpu


# ----------------------------------------------------------------------------
# Fused kernel: 7x7 conv (one K=49 MXU matmul) + ReLU + 3x3/s2/p1 maxpool.
# One grid step = one image (n) x one tile of TRO pooled output rows (t).
# ----------------------------------------------------------------------------
def _fused_conv_relu_pool_kernel(pb_ref, ph_ref, w_ref, o_ref, vscr_ref, *,
                                 TRO, W, Wo, C):
    # pb_ref : (2*TRO*W, 49) bf16  im2col patches for conv rows 2*ho0-1 .. 2*ho0+2*TRO-2
    # ph_ref : (W, 49)       bf16  halo patches for conv row 2*ho0+2*TRO-1
    # w_ref  : (49, C)       bf16  conv weights
    # o_ref  : (TRO, Wo, C)        pooled output rows for this tile
    # vscr_ref: (TRO, W+8, C) f32  scratch (8 left-pad cols + vertical-max rows)
    w = w_ref[...]

    # conv as one bf16 matmul (f32 accumulation), then ReLU
    acc_b = jnp.dot(pb_ref[...], w, preferred_element_type=jnp.float32)  # (2*TRO*W, C)
    acc_h = jnp.dot(ph_ref[...], w, preferred_element_type=jnp.float32)  # (W, C)
    body = jnp.maximum(acc_b, 0.0).reshape(TRO, 2, W, C)   # strip rows 2i / 2i+1
    halo = jnp.maximum(acc_h, 0.0).reshape(1, W, C)        # strip row 2*TRO

    # vertical 3-tap max with stride 2 (leading-dim regrouping only)
    va = body[:, 0]                                        # strip rows 2i
    vb = body[:, 1]                                        # strip rows 2i+1
    vc = jnp.concatenate([va, halo], axis=0)[1:]           # strip rows 2i+2
    vmax = jnp.maximum(jnp.maximum(va, vb), vc)            # (TRO, W, C)

    # horizontal 3-tap max with stride 2 via sublane-strided reads.
    # Column layout in the scratch: [0..7] = zeros (left padding; exact because
    # post-ReLU activations are >= 0), [8..W+7] = vmax columns 0..W-1.
    vscr_ref[:, :8, :] = jnp.zeros((TRO, 8, C), jnp.float32)
    vscr_ref[:, 8:8 + W, :] = vmax
    even = vscr_ref[:, pl.ds(8, Wo, stride=2), :]          # conv cols 2*wo
    odd = vscr_ref[:, pl.ds(9, Wo, stride=2), :]           # conv cols 2*wo + 1
    prev = vscr_ref[:, pl.ds(7, Wo, stride=2), :]          # conv cols 2*wo - 1 (col -1 -> 0)
    pooled = jnp.maximum(jnp.maximum(even, odd), prev)     # (TRO, Wo, C)
    o_ref[...] = pooled.astype(o_ref.dtype)


def conv7x7_relu_maxpool_pallas(x_nchw, w_oihw, tile_rows=None):
    """Fused Conv2d(1->C,7,1,3,bias=False) + ReLU + MaxPool2d(3,2,1). Returns NHWC."""
    N, Cin, H, W = x_nchw.shape
    assert Cin == 1, "conv0_0 expects a single input channel"
    assert H % 2 == 0 and W % 16 == 0, "demo kernel assumes even H and W % 16 == 0"
    C = w_oihw.shape[0]
    K, P = 7, 3
    KK = K * K                      # 49 real taps, no zero padding of the contraction dim
    Ho, Wo = H // 2, W // 2

    if tile_rows is None:
        tile_rows = min(Ho, 16)     # 32 is also fine on v6e/v7x; 16 fits everywhere
    tile_rows = int(max(1, min(tile_rows, Ho)))
    while Ho % tile_rows:
        tile_rows -= 1
    # keep >= 2 grid steps so both v7x TensorCores get work
    if N * (Ho // tile_rows) < 2:
        for cand in range(tile_rows // 2, 0, -1):
            if Ho % cand == 0:
                tile_rows = cand
                break
    TRO = tile_rows
    n_tiles = Ho // TRO

    # ---- XLA glue: bf16 im2col (49 taps), one prepended all-zero conv row
    # (the pool's top padding), rows flattened so the kernel refs are 2-D.
    xb = x_nchw[:, 0].astype(jnp.bfloat16)                          # (N, H, W)
    xp = jnp.pad(xb, ((0, 0), (P, P), (P, P)))                      # (N, H+6, W+6)
    cols = [xp[:, kh:kh + H, kw:kw + W] for kh in range(K) for kw in range(K)]
    patches = jnp.stack(cols, axis=-1)                              # (N, H, W, 49)
    patches = jnp.concatenate(
        [jnp.zeros((N, 1, W, KK), patches.dtype), patches], axis=1)  # (N, H+1, W, 49)
    patches = patches.reshape(N, (H + 1) * W, KK)                   # flat conv rows

    # weight (C, 1, 7, 7) -> (49, C) bf16
    wmat = jnp.transpose(w_oihw.reshape(C, KK), (1, 0)).astype(jnp.bfloat16)

    kern = functools.partial(_fused_conv_relu_pool_kernel,
                             TRO=TRO, W=W, Wo=Wo, C=C)

    down0 = pl.pallas_call(
        kern,
        out_shape=jax.ShapeDtypeStruct((N, Ho, Wo, C), x_nchw.dtype),
        grid_spec=pltpu.PrefetchScalarGridSpec(
            num_scalar_prefetch=0,
            grid=(N, n_tiles),
            in_specs=[
                # body: patch rows [2*TRO*t, 2*TRO*(t+1)) * W
                pl.BlockSpec((None, 2 * TRO * W, KK), lambda n, t: (n, t, 0)),
                # halo: patch row 2*TRO*(t+1)   (1-conv-row overlap with next tile)
                pl.BlockSpec((None, W, KK), lambda n, t: (n, 2 * TRO * (t + 1), 0)),
                # VMEM-resident weight
                pl.BlockSpec((KK, C), lambda n, t: (0, 0)),
            ],
            out_specs=pl.BlockSpec((None, TRO, Wo, C), lambda n, t: (n, t, 0, 0)),
            scratch_shapes=[pltpu.VMEM((TRO, W + 8, C), jnp.float32)],
        ),
        compiler_params=pltpu.CompilerParams(
            dimension_semantics=("parallel", "parallel"),
            vmem_limit_bytes=48 * 1024 * 1024),
    )(patches, patches, wmat)

    return down0  # NHWC


# ----------------------------------------------------------------------------
# Module wrapper mirroring the PyTorch class.
# ----------------------------------------------------------------------------
class Dense121UnetHistogramAttentionPallas:
    def __init__(self, args=None, color_pretrain=False, growth_rate=32,
                 block_config=(6, 12, 24, 48), num_init_features=64, bn_size=4,
                 key=jax.random.PRNGKey(42)):
        self.color_pretrain = color_pretrain
        # conv0_0: Conv2d(1, num_init_features, 7, stride=1, padding=3, bias=False)
        fan_in = 1 * 7 * 7
        self.conv0_0_weight = (
            jax.random.normal(key, (num_init_features, 1, 7, 7), jnp.float32)
            * jnp.sqrt(2.0 / fan_in))

    def forward(self, x, x_gray, ref, ref_gray, att_model,
                out_key=jax.random.PRNGKey(0)):
        # feature0 = relu(conv0_0(x)); down0 = pool0(feature0) — one fused Pallas kernel.
        down0 = conv7x7_relu_maxpool_pallas(x, self.conv0_0_weight)   # NHWC
        # TODO(synk): torch.randn output is RNG noise; reproduced with jax.random.normal
        # (bitwise parity with torch's RNG is not possible).
        results = {
            'output': jax.random.normal(out_key, (1, 2, 256, 256), jnp.float32),
            # The torch module computes then discards down0; kept (channel-last,
            # avoiding an extra layout transpose) for verification only.
            'down0': down0,
        }
        return results


# ----------------------------------------------------------------------------
# Main
# ----------------------------------------------------------------------------
if __name__ == "__main__":
    key = jax.random.PRNGKey(0)
    k_x, k_w, k_out = jax.random.split(key, 3)

    N, H, W = 2, 16, 16
    x = jax.random.normal(k_x, (N, 1, H, W), jnp.float32)
    x_gray = x
    ref_img = x
    ref_gray = x
    att_model = None

    model = Dense121UnetHistogramAttentionPallas(args=None, key=k_w)
    w = model.conv0_0_weight

    # Run the fused kernel with multiple tilings (exercises the cross-tile halo path).
    down_t2 = conv7x7_relu_maxpool_pallas(x, w, tile_rows=2)   # 4 row-tiles / image
    down_t4 = conv7x7_relu_maxpool_pallas(x, w, tile_rows=4)   # 2 row-tiles / image
    results = model.forward(x, x_gray, ref_img, ref_gray, att_model, out_key=k_out)
    jax.block_until_ready((down_t2, down_t4, results['output'], results['down0']))

    # ------ numerical check vs. pure-XLA reference (conv + relu + maxpool) -------
    # The kernel feeds bf16 operands to the MXU (f32 accumulation), so the
    # reference uses the same bf16-rounded inputs.
    xb = x.astype(jnp.bfloat16).astype(jnp.float32)
    wb = w.astype(jnp.bfloat16).astype(jnp.float32)
    ref_feat = jax.nn.relu(lax.conv_general_dilated(
        xb, wb, window_strides=(1, 1), padding=((3, 3), (3, 3)),
        dimension_numbers=('NCHW', 'OIHW', 'NCHW'),
        precision=lax.Precision.HIGHEST))
    ref_down = lax.reduce_window(
        ref_feat, -jnp.inf, lax.max,
        window_dimensions=(1, 1, 3, 3), window_strides=(1, 1, 2, 2),
        padding=((0, 0), (0, 0), (1, 1), (1, 1)))
    ref_nhwc = jnp.transpose(ref_down, (0, 2, 3, 1))

    assert down_t2.shape == (N, H // 2, W // 2, 64)
    assert results['down0'].shape == ref_nhwc.shape
    assert jnp.allclose(down_t2, ref_nhwc, atol=1e-2, rtol=1e-2)
    assert jnp.allclose(down_t4, ref_nhwc, atol=1e-2, rtol=1e-2)
    assert jnp.allclose(results['down0'], ref_nhwc, atol=1e-2, rtol=1e-2)
    assert results['output'].shape == (1, 2, 256, 256)

    print("KERNEL_OK")
</pallas_src>

<mosaic_0001>
module attributes {stable_mosaic.version = 11 : i64} {
  func.func @_fused_conv_relu_pool_kernel(%arg0: i32, %arg1: i32, %arg2: memref<1x64x49xbf16, #tpu.memory_space<vmem>>, %arg3: memref<1x16x49xbf16, #tpu.memory_space<vmem>>, %arg4: memref<49x64xbf16, #tpu.memory_space<vmem>>, %arg5: memref<1x2x8x64xf32, #tpu.memory_space<vmem>>, %arg6: memref<2x24x64xf32, #tpu.memory_space<vmem>>) attributes {dimension_semantics = [#tpu.dimension_semantics<parallel>, #tpu.dimension_semantics<parallel>], iteration_bounds = array<i64: 2, 4>, scalar_prefetch = 0 : i64, scratch_operands = 1 : i64, tpu.core_type = #tpu.core_type<tc>, window_params = [{transform_indices = @transform_0, window_bounds = array<i64: 1, 64, 49>}, {transform_indices = @transform_1, window_bounds = array<i64: 1, 16, 49>}, {pipeline_mode = #tpu.pipeline_mode<synchronous>, transform_indices = @transform_2, window_bounds = array<i64: 49, 64>}, {transform_indices = @transform_3, window_bounds = array<i64: 1, 2, 8, 64>}]} {
    %c0 = arith.constant 0 : index
    %c0_0 = arith.constant 0 : index
    %0 = vector.load %arg4[%c0, %c0_0] : memref<49x64xbf16, #tpu.memory_space<vmem>>, vector<49x64xbf16>
    %c0_1 = arith.constant 0 : index
    %c0_2 = arith.constant 0 : index
    %c0_3 = arith.constant 0 : index
    %1 = vector.load %arg2[%c0_1, %c0_2, %c0_3] : memref<1x64x49xbf16, #tpu.memory_space<vmem>>, vector<1x64x49xbf16>
    %2 = vector.shape_cast %1 : vector<1x64x49xbf16> to vector<64x49xbf16>
    %cst = arith.constant dense<0.000000e+00> : vector<64x64xf32>
    %3 = tpu.matmul %2, %0, %cst {dimension_numbers = #tpu.dot_dimension_numbers<[1], [0], [0], [1], [0, 0, 1, 1], [], []>} : vector<64x49xbf16>, vector<49x64xbf16>, vector<64x64xf32> -> vector<64x64xf32>
    %c0_4 = arith.constant 0 : index
    %c0_5 = arith.constant 0 : index
    %c0_6 = arith.constant 0 : index
    %4 = vector.load %arg3[%c0_4, %c0_5, %c0_6] : memref<1x16x49xbf16, #tpu.memory_space<vmem>>, vector<1x16x49xbf16>
    %5 = vector.shape_cast %4 : vector<1x16x49xbf16> to vector<16x49xbf16>
    %cst_7 = arith.constant dense<0.000000e+00> : vector<16x64xf32>
    %6 = tpu.matmul %5, %0, %cst_7 {dimension_numbers = #tpu.dot_dimension_numbers<[1], [0], [0], [1], [0, 0, 1, 1], [], []>} : vector<16x49xbf16>, vector<49x64xbf16>, vector<16x64xf32> -> vector<16x64xf32>
    %cst_8 = arith.constant 0.000000e+00 : f32
    %7 = vector.broadcast %cst_8 : f32 to vector<64x64xf32>
    %8 = arith.maximumf %3, %7 : vector<64x64xf32>
    %9 = vector.shape_cast %8 : vector<64x64xf32> to vector<2x2x16x64xf32>
    %cst_9 = arith.constant 0.000000e+00 : f32
    %10 = vector.broadcast %cst_9 : f32 to vector<16x64xf32>
    %11 = arith.maximumf %6, %10 : vector<16x64xf32>
    %12 = vector.shape_cast %11 : vector<16x64xf32> to vector<1x16x64xf32>
    %13 = vector.extract_strided_slice %9 {offsets = [0, 0, 0, 0], sizes = [2, 1, 16, 64], strides = [1, 1, 1, 1]} : vector<2x2x16x64xf32> to vector<2x1x16x64xf32>
    %14 = vector.shape_cast %13 : vector<2x1x16x64xf32> to vector<2x16x64xf32>
    %15 = vector.extract_strided_slice %9 {offsets = [0, 1, 0, 0], sizes = [2, 1, 16, 64], strides = [1, 1, 1, 1]} : vector<2x2x16x64xf32> to vector<2x1x16x64xf32>
    %16 = vector.shape_cast %15 : vector<2x1x16x64xf32> to vector<2x16x64xf32>
    %17 = tpu.concatenate %14, %12 in 0 : vector<2x16x64xf32>, vector<1x16x64xf32> -> vector<3x16x64xf32>
    %18 = vector.extract_strided_slice %17 {offsets = [1, 0, 0], sizes = [2, 16, 64], strides = [1, 1, 1]} : vector<3x16x64xf32> to vector<2x16x64xf32>
    %19 = arith.maximumf %14, %16 : vector<2x16x64xf32>
    %20 = arith.maximumf %19, %18 : vector<2x16x64xf32>
    %cst_10 = arith.constant 0.000000e+00 : f32
    %21 = vector.broadcast %cst_10 : f32 to vector<2x8x64xf32>
    %c0_11 = arith.constant 0 : index
    %c0_12 = arith.constant 0 : index
    %c0_13 = arith.constant 0 : index
    %22 = vector.load %arg6[%c0_11, %c0_12, %c0_13] : memref<2x24x64xf32, #tpu.memory_space<vmem>>, vector<2x8x64xf32>
    tpu.vector_store %arg6[%c0_11, %c0_12, %c0_13], %21 {strides = array<i32>} : memref<2x24x64xf32, #tpu.memory_space<vmem>>, vector<2x8x64xf32>,
    %c0_14 = arith.constant 0 : index
    %c8 = arith.constant 8 : index
    %c0_15 = arith.constant 0 : index
    %23 = vector.load %arg6[%c0_14, %c8, %c0_15] : memref<2x24x64xf32, #tpu.memory_space<vmem>>, vector<2x16x64xf32>
    tpu.vector_store %arg6[%c0_14, %c8, %c0_15], %20 {strides = array<i32>} : memref<2x24x64xf32, #tpu.memory_space<vmem>>, vector<2x16x64xf32>,
    %c0_16 = arith.constant 0 : index
    %c8_17 = arith.constant 8 : index
    %c0_18 = arith.constant 0 : index
    %24 = tpu.strided_load %arg6[%c0_16, %c8_17, %c0_18] {strides = array<i32: 1, 2, 1>} : memref<2x24x64xf32, #tpu.memory_space<vmem>>, vector<2x8x64xf32>
    %c0_19 = arith.constant 0 : index
    %c9 = arith.constant 9 : index
    %c0_20 = arith.constant 0 : index
    %25 = tpu.strided_load %arg6[%c0_19, %c9, %c0_20] {strides = array<i32: 1, 2, 1>} : memref<2x24x64xf32, #tpu.memory_space<vmem>>, vector<2x8x64xf32>
    %c0_21 = arith.constant 0 : index
    %c7 = arith.constant 7 : index
    %c0_22 = arith.constant 0 : index
    %26 = tpu.strided_load %arg6[%c0_21, %c7, %c0_22] {strides = array<i32: 1, 2, 1>} : memref<2x24x64xf32, #tpu.memory_space<vmem>>, vector<2x8x64xf32>
    %27 = arith.maximumf %24, %25 : vector<2x8x64xf32>
    %28 = arith.maximumf %27, %26 : vector<2x8x64xf32>
    %c0_23 = arith.constant 0 : index
    %c0_24 = arith.constant 0 : index
    %c0_25 = arith.constant 0 : index
    %c0_26 = arith.constant 0 : index
    %29 = vector.load %arg5[%c0_23, %c0_24, %c0_25, %c0_26] : memref<1x2x8x64xf32, #tpu.memory_space<vmem>>, vector<1x2x8x64xf32>
    %30 = vector.shape_cast %29 : vector<1x2x8x64xf32> to vector<2x8x64xf32>
    %31 = vector.shape_cast %28 : vector<2x8x64xf32> to vector<1x2x8x64xf32>
    tpu.vector_store %arg5[%c0_23, %c0_24, %c0_25, %c0_26], %31 {strides = array<i32>} : memref<1x2x8x64xf32, #tpu.memory_space<vmem>>, vector<1x2x8x64xf32>,
    return
  }
  func.func @transform_0(%arg0: i32, %arg1: i32) -> (i32, i32, i32) {
    %c0_i32 = arith.constant 0 : i32
    %c0_i32_0 = arith.constant 0 : i32
    return %arg0, %arg1, %c0_i32 : i32, i32, i32
  }
  func.func @transform_1(%arg0: i32, %arg1: i32) -> (i32, i32, i32) {
    %c1_i32 = arith.constant 1 : i32
    %0 = arith.addi %arg1, %c1_i32 : i32
    %c4_i32 = arith.constant 4 : i32
    %1 = arith.muli %c4_i32, %0 : i32
    %c0_i32 = arith.constant 0 : i32
    %c0_i32_0 = arith.constant 0 : i32
    return %arg0, %1, %c0_i32 : i32, i32, i32
  }
  func.func @transform_2(%arg0: i32, %arg1: i32) -> (i32, i32) {
    %c0_i32 = arith.constant 0 : i32
    %c0_i32_0 = arith.constant 0 : i32
    %c0_i32_1 = arith.constant 0 : i32
    return %c0_i32, %c0_i32_0 : i32, i32
  }
  func.func @transform_3(%arg0: i32, %arg1: i32) -> (i32, i32, i32, i32) {
    %c0_i32 = arith.constant 0 : i32
    %c0_i32_0 = arith.constant 0 : i32
    %c0_i32_1 = arith.constant 0 : i32
    return %arg0, %arg1, %c0_i32, %c0_i32_0 : i32, i32, i32, i32
  }
}

</mosaic_0001>

<bundles_post_ra>
// kernel: tpu_custom_call.1
= control target key start
LH: loop header
LB: loop body
LE: loop exit
PB: predicated region body
PF: predicated region fallthrough
CT: control target
= control target key end

     0   :  { %8 = vsyncpa [#allocation4], 0  ;;  %s1079_s0 = inlined_call_operand.vmem [shape: bf16[2,272,49], index: 0, kind: input, shape index: {}]   ;;  %s1080_s1 = inlined_call_operand.vmem [shape: bf16[2,272,49], index: 1, kind: input, shape index: {}]   ;;  %s1081_s2 = inlined_call_operand.vmem [shape: bf16[49,64], index: 2, kind: input, shape index: {}]   ;;  %s1082_s3 = inlined_call_operand.hbm [shape: f32[2,8,8,64], index: 3, kind: output, shape index: {}]  }
   0x1   :  { %10 = vsyncpa [#allocation4 + $0x1], 0  ;;  %s912_s12 = smov 0   ;;  %s914_s13 = smov 0  }
   0x2   :  { %s916_s14 = smov 0   ;;  %s918_s15 = smov 0  }
   0x3   :  { %s920_s16 = smov 0   ;;  %s922_s17 = smov 0  }
   0x4   :  { %s924_s18 = smov 0   ;;  %s926_s19 = smov 0  }
   0x5 LB: > { %s621_s20 = sadd.s32 4294967295, %s884_s19   ;;  %s622_s21 = sadd.s32 4294967294, %s884_s19   ;;  %s884_s19 = sphi %s926_s19, %s16_s19   ;;  %s880_s18 = sphi %s924_s18, %s1091_s18   ;;  %s876_s17 = sphi %s922_s17, %s1090_s17   ;;  %s872_s16 = sphi %s920_s16, %s1089_s16   ;;  %s868_s15 = sphi %s918_s15, %s1088_s15   ;;  %s864_s14 = sphi %s916_s14, %s1087_s14   ;;  %s860_s13 = sphi %s914_s13, %s1086_s13   ;;  %s856_s12 = sphi %s912_s12, %s1085_s12  }
   0x6   : > { %s25_s22 = sadd.s32 1, %s876_s17  ;;  %s28_s23 = sadd.s32 1, %s880_s18 }
   0x7   : > { %p26_p0 = scmp.ge.s32.totalorder %s25_s22, 4  ;;  %p128_p1 = scmp.ne.s32.totalorder %s864_s14, %s860_s13 }
   0x8   : > { %p129_p2 = scmp.eq.s32.totalorder %s621_s20, 7  ;;  %p134_p5 = scmp.ne.s32.totalorder %s860_s13, %s856_s12 }
   0x9   : > { %s1093_s22 = smov (%p26_p0, %s25_s22), 0  ;;  %s1095_s23 = smov (!%p26_p0, %s28_s23), %s880_s18 }
   0xa   : > { %s114_s24 = ssub.s32 %s876_s17, %s1093_s22  ;;  %p963_p3 = por %p129_p2, %p128_p1 }
   0xb   : > { %p30_p4 = scmp.ge.s32.totalorder %s1095_s23, 2  ;;  %p135_p6 = scmp.eq.s32.totalorder %s622_s21, 7 }
   0xc   : > { %p627_p7 = scmp.ge.s32.totalorder %s884_s19, 1  ;;  %p194_p9 = scmp.lt.s32.totalorder %s884_s19, 9 }
   0xd   : > { %s1097_s23 = smov (%p30_p4, %s1095_s23), 0  ;;  %p972_p8 = por %p135_p6, %p134_p5 }
   0xe   : > { %s113_s27 = ssub.s32 %s880_s18, %s1097_s23  ;;  %s118_s28 = sadd.s32 1, %s864_s14 }
   0xf   : > { %s115_s29 = sor.u32 %s114_s24, %s113_s27  ;;  %p195_p10 = pnand %p627_p7, %p194_p9 }
  0x10   : > { %p116_p11 = scmp.eq.s32.totalorder %s115_s29, 0  ;;  %v781_v0 = vld [vmem:[%s1081_s2] sm:$0xff] (!%p195_p10)   ;;  %v782_v1 = vld [vmem:[%s1081_s2 + $0x8] sm:$0xff] (!%p195_p10)   ;;  %v886_v2 = vmov (!%p195_p10), 0.0   ;;  %vm340_vm0 = vcmask (!%p195_p10), 1040384   ;;  %v783_v3 = vld [vmem:[%s1081_s2 + $0x10] sm:$0xff] (!%p195_p10)  }
  0x11   : > { %198 = sbr.rel (%p195_p10) target bundleno = 290 (0x122), region = 32  ;;  %692 = vmatprep.subr.bf16.mxu1 (!%p195_p10), %v886_v2  ;;  %676 = vmatprep.subr.bf16.mxu0 (!%p195_p10), %v781_v0  ;;  %v784_v4 = vld [vmem:[%s1081_s2 + $0x18] ss:$0 sps:$4 sm:$0x11] (!%p195_p10)   ;;  %s629_s20 = sshll.u32 (!%p195_p10), %s868_s15, 3  ;;  %v887_v5 = vmov (!%p195_p10), 0  }
  0x12   : > { %s981_s30 = scalar_select %p116_p11, %s864_s14, %s118_s28  }
  0x13   : > { %693 = vmatpush3.bf16.msra.mxu1 (!%p195_p10), %v781_v0  ;;  %677 = vmatpush3.bf16.msra.mxu0 (!%p195_p10), %v781_v0  ;;  %p242_p12 = scmp.lt.s32.totalorder (!%p195_p10), %s872_s16, 1  ;;  %v342_v6 = vsel (!%p195_p10), %vm340_vm0, 65535, %v887_v5  ;;  %p244_p13 = scmp.lt.s32.totalorder (!%p195_p10), %s629_s20, 33  ;;  %vm888_vm1 = vmmov (!%p195_p10), 0   ;;  %vm327_vm2 = vcmask (!%p195_p10), 400384   ;;  %vm480_vm3 = vcmask (!%p195_p10), 523264  }
  0x14   : > { %694 = vmatprep.subr.bf16.mxu1 (!%p195_p10), %v886_v2  ;;  %678 = vmatprep.subr.bf16.mxu0 (!%p195_p10), %v782_v1  ;;  %s662_s21 = sadd.s32 (!%p195_p10), 8, %s629_s20  ;;  %v344_v7 = vand.u32 (!%p195_p10), %v784_v4, %v342_v6  ;;  %481 = vst.msk [vmem:[#allocation2] sm:$0xff] (!%p195_p10), %vm480_vm3, %v886_v2  ;;  %482 = vst.msk [vmem:[#allocation2 + $0x18] sm:$0xff] (!%p195_p10), %vm480_vm3, %v886_v2  ;;  %s889_s9 = smov (!%p195_p10), [#allocation3]  }
  0x15   : > { %700 = vmatprep.mubr.msk.bf16.mxu1 (!%p195_p10), %vm888_vm1, %v886_v2  ;;  %p260_p0 = scmp.lt.s32.totalorder (!%p195_p10), %s662_s21, 33  ;;  %s794_s10 = sshll.u32 (!%p195_p10), %s889_s9, 4  ;;  %s795_s10 = int_to_ptr.vmem [resolvable:$false] %s794_s10 }
  0x17   : > { %695 = vmatpush3.bf16.msra.mxu1 (!%p195_p10), %v782_v1  ;;  %679 = vmatpush3.bf16.msra.mxu0 (!%p195_p10), %v782_v1 }
  0x18   : > { %s243_s24 = scalar_select %p242_p12, %s872_s16, 1  ;;  %696 = vmatprep.subr.bf16.mxu1 %v886_v2  ;;  %680 = vmatprep.subr.bf16.mxu0 %v783_v3 }
  0x19   : > { %s1099_s20 = smov (!%p244_p13, %s629_s20), 33  ;;  %s1101_s21 = smov (!%p260_p0, %s662_s21), 33 }
  0x1a   : > { %s704_s27 = smul.u32 34, %s243_s24  ;;  %s649_s24 = sshll.u32 %s868_s15, 1 }
  0x1b   : > { %697 = vmatpush3.bf16.msra.mxu1 %v783_v3  ;;  %681 = vmatpush3.bf16.msra.mxu0 %v783_v3 }
  0x1c   : > { %s247_s28 = sadd.s32 %s704_s27, %s1099_s20  ;;  %698 = vmatprep.subr.bf16.mxu1 %v886_v2  ;;  %682 = vmatprep.subr.bf16.mxu0 %v344_v7  ;;  %s263_s7 = sadd.s32 %s704_s27, %s1101_s21 }
  0x1d   : > { %s630_s29 = sshll.u32 %s247_s28, 2  ;;  %s633_s8 = sshll.u32 %s263_s7, 2 }
  0x1e   : > { %s249_s6 = scalar_lea.vmem %s1079_s0, %s630_s29  ;;  %s265_s11 = scalar_lea.vmem %s1080_s1, %s633_s8 }
  0x1f   : > { %v785_v8 = vld [vmem:[%s249_s6] sm:$0xff]   ;;  %v786_v9 = vld [vmem:[%s249_s6 + $0x8] sm:$0xff]   ;;  %699 = vmatpush3.bf16.msra.mxu1 %v344_v7  ;;  %683 = vmatpush3.bf16.msra.mxu0 %v344_v7  ;;  %v787_v10 = vld [vmem:[%s249_s6 + $0x10] sm:$0xff]   ;;  %s234_s20 = sand.u32 1, %s860_s13   ;;  %s650_s27 = sshll.u32 %s872_s16, 3 }
  0x20   : > { %684 = vmatprep.mubr.msk.bf16.mxu0 %vm327_vm2, %v785_v8  ;;  %v789_v11 = vld [vmem:[%s265_s11] sm:$0xff]   ;;  %v788_v12 = vld [vmem:[%s249_s6 + $0x18] sm:$0xff]   ;;  %s628_s21 = sshll.u32 %s234_s20, 4  ;;  %s518_s28 = sadd.s32 %s650_s27, %s649_s24 }
  0x21   : > { %s651_s29 = sshll.u32 %s518_s28, 7  ;;  %s236_s4 = scalar_lea.vmem [#allocation3], %s628_s21 }
  0x22   : > { %685 = vmatmul.mubr.msk.bf16.vlgmr.msra.gmra.mrb[0].mxu0 %vm327_vm2, %v786_v9  ;;  %701 = vmatmul.mubr.msk.bf16.vlgmr.msra.gmra.mrb[0].mxu1 %vm327_vm2, %v789_v11  ;;  %s521_s5 = sshll.u32 %s236_s4, 4  ;;  %s1021_s8 = scalar_lea.hbm %s1082_s3, %s651_s29  ;;  %s1023_s5 = int_to_ptr.vmem [resolvable:$true] %s521_s5 }
  0x23   : > { %688 = vmatprep.mubr.msk.bf16.mxu0 %vm327_vm2, %v787_v10  ;;  %s1027_s15 = scalar_lea.sflag [#allocation4], %s234_s20  ;;  %s790_s16 = scalar_lea.vmem %s1023_s5, 256 }
  0x24   : > { %p791_p1 = scmp.ne.s32.totalorder %s1023_s5, %s790_s16  ;;  %s796_s11 = scalar_lea.vmem %s795_s10, 512 }
  0x25   : > { %p797_p5 = scmp.lt.s32.totalorder %s1023_s5, %s795_s10  ;;  %p798_p6 = scmp.lt.s32.totalorder %s796_s11, %s790_s16 }
  0x26   : > { %p792_p2 = pnand %p791_p1, %p963_p3 }
  0x27   : > { %p799_p7 = por %p798_p6, %p797_p5 }
  0x28   : > { %p793_p4 = pneg %p792_p2 }
  0x2a   : > { %689 = vmatmul.mubr.msk.bf16.gmra.mrb[4].mxu0 %vm327_vm2, %v788_v12  ;;  %p800_p9 = pnand %p799_p7, %p793_p4 }
  0xf5   : > { %v686_v13 = vpop.f32.mrb[0].mxu0  ;;  %v455_v18 = vpop.f32.mrb[0].mxu1 }
  0xf6   : > { %v464_v14 = vmax.f32 %v686_v13, 0.0  ;;  %v380_v15 = vpop.f32.mrb[1].mxu0  ;;  %v702_v21 = vpop.f32.mrb[1].mxu1  ;;  %v470_v30 = vmax.f32 %v455_v18, 0.0 }
  0xf7   : > { %v462_v16 = vmax.f32 %v380_v15, 0.0  ;;  %v687_v17 = vpop.f32.mrb[2].mxu0  ;;  %v458_v24 = vpop.f32.mrb[2].mxu1 }
  0xf8   : > { %v465_v19 = vmax.f32 %v687_v17, 0.0  ;;  %v383_v20 = vpop.f32.mrb[3].mxu0  ;;  %v703_v25 = vpop.f32.mrb[3].mxu1  ;;  %v471_v39 = vmax.f32 %v458_v24, 0.0 }
  0xf9   : > { %v472_v22 = vmax.f32 %v462_v16, %v464_v14  ;;  %v463_v23 = vmax.f32 %v383_v20, 0.0 }
  0xfb   : > { %v473_v26 = vmax.f32 %v463_v23, %v465_v19 }
  0xfd   : > { %v690_v27 = vpop.f32.mrb[4].mxu0 }
  0xfe   : > { %v468_v28 = vmax.f32 %v690_v27, 0.0  ;;  %v396_v29 = vpop.f32.mrb[5].mxu0 }
  0xff   : > { %v466_v31 = vmax.f32 %v396_v29, 0.0  ;;  %v691_v32 = vpop.f32.mrb[6].mxu0 }
 0x100   : > { %v469_v33 = vmax.f32 %v691_v32, 0.0  ;;  %v399_v34 = vpop.f32.mrb[7].mxu0 }
 0x101   : > { %v474_v35 = vmax.f32 %v466_v31, %v468_v28  ;;  %v476_v36 = vmax.f32 %v472_v22, %v466_v31  ;;  %v467_v37 = vmax.f32 %v399_v34, 0.0 }
 0x103   : > { %v478_v38 = vmax.f32 %v474_v35, %v470_v30  ;;  %483 = vst.msk [vmem:[#allocation2 + $0x8] sm:$0xff] %vm480_vm3, %v476_v36  ;;  %v475_v40 = vmax.f32 %v467_v37, %v469_v33  ;;  %v477_v41 = vmax.f32 %v473_v26, %v467_v37 }
 0x105   : > { %485 = vst.msk [vmem:[#allocation2 + $0x20] sm:$0xff] %vm480_vm3, %v478_v38  ;;  %v479_v42 = vmax.f32 %v475_v40, %v471_v39  ;;  %484 = vst.msk [vmem:[#allocation2 + $0x10] sm:$0xff] %vm480_vm3, %v477_v41 }
 0x107   : > { %486 = vst.msk [vmem:[#allocation2 + $0x28] sm:$0xff] %vm480_vm3, %v479_v42 }
 0x10c   : > { %v488_v43 = vld [vmem:[#allocation2 + $0x8] ss:$2 sm:$0xff]  ;;  %v492_v44 = vld [vmem:[#allocation2 + $0x9] ss:$2 sm:$0xff] }
 0x10d   : > { %v499_v45 = vmax.f32 %v488_v43, %v492_v44  ;;  %v496_v48 = vld [vmem:[#allocation2 + $0x7] ss:$2 sm:$0xff] }
 0x10e   : > { %v490_v46 = vld [vmem:[#allocation2 + $0x20] ss:$2 sm:$0xff]  ;;  %v494_v47 = vld [vmem:[#allocation2 + $0x21] ss:$2 sm:$0xff] }
 0x10f   : > { %v500_v49 = vmax.f32 %v490_v46, %v494_v47  ;;  %v501_v50 = vmax.f32 %v499_v45, %v496_v48  ;;  %v498_v51 = vld [vmem:[#allocation2 + $0x1f] ss:$2 sm:$0xff] }
 0x111   : > { %v502_v52 = vmax.f32 %v500_v49, %v498_v51  ;;  %503 = vst.msk [vmem:[%s236_s4] sm:$0xff] %vm480_vm3, %v501_v50 }
 0x113   : > { %504 = vst.msk [vmem:[%s236_s4 + $0x8] sm:$0xff] %vm480_vm3, %v502_v52 }
 0x114   : > { %803 = shalt.err (!%p800_p9)
}
 0x115   : > { %s804_s20 = scalar_lea.hbm %s1021_s8, 256  ;;  %s808_s27 = scalar_lea.hbm %s1082_s3, 2048 }
 0x116   : > { %p805_p10 = scmp.ne.s32.totalorder %s1021_s8, %s804_s20  ;;  %p809_p13 = scmp.lt.u32.totalorder %s1021_s8, %s1082_s3 }
 0x117   : > { %p810_p0 = scmp.lt.u32.totalorder %s808_s27, %s804_s20  ;;  %p812_p2 = scmp.lt.u32.totalorder %s804_s20, %s1021_s8 }
 0x118   : > { %p806_p11 = pnand %p805_p10, %p963_p3 }
 0x119   : > { %p811_p1 = por %p810_p0, %p809_p13 }
 0x11a   : > { %p807_p12 = pneg %p806_p11 }
 0x11b   : > { %p813_p4 = por %p812_p2, %p811_p1 }
 0x11d   : > { %p814_p5 = pnand %p813_p4, %p807_p12 }
 0x11f   : > { %817 = shalt.err (!%p814_p5)
}
 0x120   : > { %s890_s4 = smov 128   ;;  %s891_s6 = smov 8  }
 0x121   : > { %705 = dma.vmem_to_hbm [thread:$0]  (%p963_p3), %s1023_s5, 256, %s1021_s8, %s1027_s15, %s890_s4, %s890_s4, %s891_s6  }
 0x122 PF: > { %p711_p6 = scmp.ge.s32.totalorder %s884_s19, 2  ;;  %s536_s7 = sand.u32 1, %s856_s12  }
 0x123   : > { %s537_s16 = scalar_lea.sflag [#allocation4], %s536_s7 }
 0x124   : > { %p708_p7 = pnand %p711_p6, %p972_p8 }
 0x126   : > { %851 = dma.done.wait (!%p708_p7), %s537_s16, 256  }
 0x127   : > { %853 = vsyncadd (!%p708_p7), %s537_s16, 4294967040  ;;  %s16_s19 = sadd.s32 1, %s884_s19   ;;  %s1085_s12 = smov %s860_s13 }
 0x128   : > { %p13_p9 = scmp.ge.s32.totalorder %s16_s19, 10   ;;  %s1086_s13 = smov %s864_s14 }
 0x129   : > { %s1087_s14 = smov %s981_s30  ;;  %s1088_s15 = smov %s876_s17 }
 0x12a   : > { %s1089_s16 = smov %s880_s18  ;;  %s1090_s17 = smov %s1093_s22 }
 0x12b   : > { %s1091_s18 = smov %s1097_s23  ;;  %15 = sbr.rel (!%p13_p9) target bundleno = 5 (0x5), region = 76 }
 0x132   :  { %542 = vsyncpa [#allocation4], 1 }
 0x133   :  { %544 = vsyncpa [#allocation4 + $0x1], 1 }

</bundles_post_ra>
